<compile_context>
chip_gen: v6e
topology: v6e:2x2x1
jax: 0.10.0
libtpu: 0.0.40
codegen_flags: <defaults>
</compile_context>

<pallas_src>
import functools

import jax
import jax.numpy as jnp
from jax.experimental import pallas as pl
from jax.experimental.pallas import tpu as pltpu


def _round_up(x, m):
    return (x + m - 1) // m * m


def _supcon_kernel(ta_ref, tall_ref, cbias_ref, cid_ref, qa_ref, qallt_ref,
                   out_ref, m_sc, d_sc, ms_sc, ps_sc, *, two_b, row_tile):
    """One (row_tile, col_tile) slab of the SupCon loss, online over columns.

    ta_ref:    (Tm, 1)   int32    anchor labels for this row tile (-2 pad)
    tall_ref:  (1, Tn)   int32    labels of anchors+prototypes (-1 pad)
    cbias_ref: (1, Tn)   f32      0 for real columns, -1e30 for N-padding
    cid_ref:   (1, Tn)   int32    global column index (self-exclusion)
    qa_ref:    (Tm, D)   f32/bf16 anchor embeddings for this row tile
    qallt_ref: (D, Tn)   f32/bf16 [anchors; prototypes]^T * (1/T)
    out_ref:   (8, 128)  f32      per-row-tile partial sum of -mean_log_prob_pos
    m/d/ms/ps: (Tm, 1)   f32      online-softmax running state (scratch)
    """
    j = pl.program_id(1)

    @pl.when(j == 0)
    def _():
        m_sc[...] = jnp.full_like(m_sc, -1e30)
        d_sc[...] = jnp.zeros_like(d_sc)
        ms_sc[...] = jnp.zeros_like(ms_sc)
        ps_sc[...] = jnp.zeros_like(ps_sc)

    # (Tm, D) @ (D, Tn): MXU contraction with f32 accumulation.  1/T is folded
    # into the RHS on the host, so there is no per-element scaling here.
    logits = jax.lax.dot_general(
        qa_ref[...], qallt_ref[...], (((1,), (0,)), ((), ())),
        preferred_element_type=jnp.float32)
    logits = logits + cbias_ref[...]            # padded columns -> -1e30

    tm = logits.shape[0]
    row_ids = (pl.program_id(0) * row_tile
               + jax.lax.broadcasted_iota(jnp.int32, (tm, 1), 0))
    not_self = cid_ref[...] != row_ids                              # (Tm, Tn)
    pos_f = (not_self & (ta_ref[...] == tall_ref[...])).astype(jnp.float32)

    m_old = m_sc[...]
    m_new = jnp.maximum(m_old, jnp.max(logits, axis=1, keepdims=True))
    shifted = logits - m_new

    # Denominator: exp over real, non-self columns (bias already kills padding).
    e = jnp.where(not_self, jnp.exp(shifted), 0.0)
    alpha = jnp.exp(m_old - m_new)
    d_sc[...] = d_sc[...] * alpha + jnp.sum(e, axis=1, keepdims=True)

    # sum(mask * (logit - m)) tracked relative to the running max m.
    ps_sc[...] = (ps_sc[...] + ms_sc[...] * (m_old - m_new)
                  + jnp.sum(pos_f * shifted, axis=1, keepdims=True))
    ms_sc[...] = ms_sc[...] + jnp.sum(pos_f, axis=1, keepdims=True)
    m_sc[...] = m_new

    @pl.when(j == pl.num_programs(1) - 1)
    def _():
        ms = ms_sc[...]
        # sum(mask*log_prob) = ps - ms*log(d);  1/ms goes to the EUP.
        loss_row = -(ps_sc[...] - jnp.log(d_sc[...]) * ms) * pl.reciprocal(
            ms, approx=True)
        valid = row_ids < two_b                  # mask padded anchor rows
        tile_sum = jnp.sum(jnp.where(valid, loss_row, 0.0))
        out_ref[...] = jnp.broadcast_to(jnp.reshape(tile_sum, (1, 1)),
                                        out_ref.shape)


def targeted_supcon_pda_no_weight_loss(q, labels, prototypes, prototypes_labels,
                                       temperature=0.07,
                                       compute_dtype=jnp.bfloat16,
                                       col_tile=None):
    """q: (2B, D), labels: (B,), prototypes: (P, D), prototypes_labels: (P, 1).
    Returns the scalar f32 loss (same semantics as the PyTorch module)."""
    b = int(labels.shape[0])
    two_b = 2 * b
    p = int(prototypes.shape[0])
    d = int(q.shape[1])
    n_real = two_b + p

    cdt = jnp.dtype(compute_dtype)
    itemsize = cdt.itemsize
    d_pad = _round_up(d, 128)

    # Generation-aware VMEM budget (~100 MiB usable on v5e/v6e, ~50 MiB on v7x).
    try:
        vmem_cap = int(pltpu.get_tpu_info().vmem_capacity_bytes)
    except Exception:
        vmem_cap = 64 * 2**20
    vmem_limit = int(vmem_cap * 0.78)

    # ----- column tiling: resident single-buffered RHS if it fits ----------
    n_pad0 = _round_up(n_real, 128)
    rhs_budget = (vmem_limit * 2) // 5
    if col_tile is not None:
        tn = min(_round_up(int(col_tile), 128), n_pad0)
    elif d_pad * n_pad0 * itemsize <= rhs_budget:
        tn = n_pad0
    else:
        tn = ((rhs_budget // (2 * d_pad * itemsize)) // 128) * 128
        tn = int(min(max(tn, 512), n_pad0))
    n_pad = _round_up(n_real, tn)
    n_col_tiles = n_pad // tn
    rhs_bufs = 1 if n_col_tiles == 1 else 2

    # ----- row tiling: fill remaining VMEM, 256-aligned for the MXU --------
    remaining = vmem_limit - rhs_bufs * d_pad * tn * itemsize - 2 * 8 * 128 * 4
    per_row = 2 * (d_pad * itemsize + 4) + 8 * tn * 4 + 4 * 4
    tm_budget = max(16, remaining // per_row)
    row_align = 256 if two_b >= 256 else 16
    tm = int(min(tm_budget, 2048, _round_up(two_b, row_align)))
    tm = max(row_align, (tm // row_align) * row_align)
    two_b_pad = _round_up(two_b, tm)
    n_row_tiles = two_b_pad // tm
    # Make sure v7x's second TensorCore gets work when the batch allows it.
    if n_row_tiles < 2 and two_b_pad >= 2 * row_align:
        tm = max(row_align, ((tm // 2) // row_align) * row_align)
        two_b_pad = _round_up(two_b, tm)
        n_row_tiles = two_b_pad // tm

    # ----- host-side data prep ---------------------------------------------
    inv_t = 1.0 / float(temperature)
    labels_i32 = labels.reshape(-1).astype(jnp.int32)
    proto_labels_i32 = prototypes_labels.reshape(-1).astype(jnp.int32)

    # TODO(synk): optional fp8(e4m3) contraction path for v7x behind an
    # accuracy flag (halves resident-RHS VMEM and ~2x MXU for large D).
    q_anchor = jnp.zeros((two_b_pad, d_pad), cdt).at[:two_b, :d].set(
        q.astype(cdt))
    # 1/T folded into the resident RHS once, in f32, before the cast.
    q_all_t = jnp.zeros((d_pad, n_pad), cdt).at[:d, :n_real].set(
        (jnp.concatenate([q, prototypes], axis=0).astype(jnp.float32).T
         * inv_t).astype(cdt))

    # Pad sentinels (-2 anchor rows / -1 columns) never match real labels.
    t_anchor = jnp.full((two_b_pad, 1), -2, jnp.int32).at[:two_b, 0].set(
        jnp.concatenate([labels_i32, labels_i32], axis=0))
    t_all = jnp.full((1, n_pad), -1, jnp.int32).at[0, :n_real].set(
        jnp.concatenate([labels_i32, labels_i32, proto_labels_i32], axis=0))
    col_ids = jnp.arange(n_pad, dtype=jnp.int32).reshape(1, n_pad)
    col_bias = jnp.where(jnp.arange(n_pad) < n_real,
                         jnp.float32(0.0),
                         jnp.float32(-1e30)).reshape(1, n_pad)

    # Single-buffer any input whose block index never changes over the grid.
    def _spec(block_shape, index_map, constant):
        if constant:
            return pl.BlockSpec(block_shape, index_map,
                                pipeline_mode=pl.Buffered(1))
        return pl.BlockSpec(block_shape, index_map)

    row_varies = n_row_tiles > 1
    col_varies = n_col_tiles > 1
    in_specs = [
        _spec((tm, 1), lambda i, j: (i, 0), not row_varies),      # anchor labels
        _spec((1, tn), lambda i, j: (0, j), not col_varies),      # all labels
        _spec((1, tn), lambda i, j: (0, j), not col_varies),      # column bias
        _spec((1, tn), lambda i, j: (0, j), not col_varies),      # column ids
        _spec((tm, d_pad), lambda i, j: (i, 0), not row_varies),  # anchor rows
        _spec((d_pad, tn), lambda i, j: (0, j), not col_varies),  # RHS (1/T)
    ]

    kernel = functools.partial(_supcon_kernel, two_b=two_b, row_tile=tm)

    per_tile = pl.pallas_call(
        kernel,
        out_shape=jax.ShapeDtypeStruct((8 * n_row_tiles, 128), jnp.float32),
        grid=(n_row_tiles, n_col_tiles),
        in_specs=in_specs,
        out_specs=pl.BlockSpec((8, 128), lambda i, j: (i, 0)),
        scratch_shapes=[pltpu.VMEM((tm, 1), jnp.float32)] * 4,
        compiler_params=pltpu.CompilerParams(
            dimension_semantics=("parallel", "arbitrary"),
            vmem_limit_bytes=vmem_limit),
    )(t_anchor, t_all, col_bias, col_ids, q_anchor, q_all_t)

    # Tiny epilogue: every (8, 128) output block holds one row tile's partial
    # sum broadcast, so divide the grand total by 8 * 2B.
    return jnp.sum(per_tile[:, 0]) / (8.0 * two_b)


def _reference_loss(q, labels, prototypes, prototypes_labels, temperature=0.07):
    """Pure-JAX transcription of the PyTorch forward, for verification."""
    b = labels.shape[0]
    two_b = 2 * b
    targets = jnp.concatenate(
        [labels.reshape(-1, 1), labels.reshape(-1, 1),
         prototypes_labels.astype(labels.dtype)], axis=0)
    mask = (targets[:two_b] == targets.T).astype(jnp.float32)
    n = targets.shape[0]
    logits_mask = jnp.ones((two_b, n), jnp.float32)
    logits_mask = logits_mask.at[jnp.arange(two_b), jnp.arange(two_b)].set(0.0)
    mask = mask * logits_mask
    q_all = jnp.concatenate([q, prototypes], axis=0)
    logits = q_all[:two_b] @ q_all.T / temperature
    logits = logits - jnp.max(logits, axis=1, keepdims=True)
    exp_logits = jnp.exp(logits) * logits_mask
    log_prob = logits - jnp.log(jnp.sum(exp_logits, axis=1, keepdims=True))
    mean_log_prob_pos = jnp.sum(mask * log_prob, axis=1) / jnp.sum(mask, axis=1)
    return jnp.mean(-mean_log_prob_pos)


if __name__ == "__main__":
    key = jax.random.PRNGKey(0)
    k1, k2, k3, k4, k5 = jax.random.split(key, 5)

    # Small shapes implied by the module: B samples x 2 views, P prototypes.
    B, D, P = 4, 32, 5
    q = jax.random.normal(k1, (2 * B, D), dtype=jnp.float32)
    q = q / jnp.linalg.norm(q, axis=1, keepdims=True)
    prototypes = jax.random.normal(k2, (P, D), dtype=jnp.float32)
    prototypes = prototypes / jnp.linalg.norm(prototypes, axis=1, keepdims=True)
    labels = jax.random.randint(k3, (B,), 0, P, dtype=jnp.int32)
    prototypes_labels = jnp.arange(P, dtype=jnp.int32).reshape(P, 1)

    ref = _reference_loss(q, labels, prototypes, prototypes_labels, 0.07)

    # f32 compute path (tight check, single resident column tile).
    loss_f32 = targeted_supcon_pda_no_weight_loss(
        q, labels, prototypes, prototypes_labels, 0.07,
        compute_dtype=jnp.float32)
    loss_f32 = jax.block_until_ready(loss_f32)
    assert jnp.allclose(loss_f32, ref, rtol=2e-2, atol=2e-2), (loss_f32, ref)

    # bf16 compute path (default, MXU-native inputs; looser tolerance).
    loss_bf16 = targeted_supcon_pda_no_weight_loss(
        q, labels, prototypes, prototypes_labels, 0.07)
    loss_bf16 = jax.block_until_ready(loss_bf16)
    assert jnp.allclose(loss_bf16, ref, rtol=8e-2, atol=8e-2), (loss_bf16, ref)

    # Larger case forcing multiple row tiles AND multiple column tiles so the
    # flash-style online-softmax column accumulation path is exercised.
    B2, D2, P2 = 80, 32, 5
    q2 = jax.random.normal(k4, (2 * B2, D2), dtype=jnp.float32)
    q2 = q2 / jnp.linalg.norm(q2, axis=1, keepdims=True)
    prototypes2 = jax.random.normal(k5, (P2, D2), dtype=jnp.float32)
    prototypes2 = prototypes2 / jnp.linalg.norm(prototypes2, axis=1,
                                                keepdims=True)
    labels2 = jax.random.randint(k3, (B2,), 0, P2, dtype=jnp.int32)
    prototypes_labels2 = jnp.arange(P2, dtype=jnp.int32).reshape(P2, 1)

    ref2 = _reference_loss(q2, labels2, prototypes2, prototypes_labels2, 0.07)
    loss2 = targeted_supcon_pda_no_weight_loss(
        q2, labels2, prototypes2, prototypes_labels2, 0.07,
        compute_dtype=jnp.float32, col_tile=128)
    loss2 = jax.block_until_ready(loss2)
    assert jnp.allclose(loss2, ref2, rtol=2e-2, atol=2e-2), (loss2, ref2)

    print("KERNEL_OK")
</pallas_src>

<mosaic_0001>
module attributes {stable_mosaic.version = 11 : i64} {
  func.func @_supcon_kernel(%arg0: i32, %arg1: i32, %arg2: memref<16x1xi32, #tpu.memory_space<vmem>>, %arg3: memref<1x128xi32, #tpu.memory_space<vmem>>, %arg4: memref<1x128xf32, #tpu.memory_space<vmem>>, %arg5: memref<1x128xi32, #tpu.memory_space<vmem>>, %arg6: memref<16x128xf32, #tpu.memory_space<vmem>>, %arg7: memref<128x128xf32, #tpu.memory_space<vmem>>, %arg8: memref<8x128xf32, #tpu.memory_space<vmem>>, %arg9: memref<16x1xf32, #tpu.memory_space<vmem>>, %arg10: memref<16x1xf32, #tpu.memory_space<vmem>>, %arg11: memref<16x1xf32, #tpu.memory_space<vmem>>, %arg12: memref<16x1xf32, #tpu.memory_space<vmem>>) attributes {dimension_semantics = [#tpu.dimension_semantics<parallel>, #tpu.dimension_semantics<arbitrary>], iteration_bounds = array<i64: 1, 1>, scalar_prefetch = 0 : i64, scratch_operands = 4 : i64, tpu.core_type = #tpu.core_type<tc>, window_params = [{pipeline_mode = #tpu.pipeline_mode<synchronous>, transform_indices = @transform_0, window_bounds = array<i64: 16, 1>}, {pipeline_mode = #tpu.pipeline_mode<synchronous>, transform_indices = @transform_1, window_bounds = array<i64: 1, 128>}, {pipeline_mode = #tpu.pipeline_mode<synchronous>, transform_indices = @transform_2, window_bounds = array<i64: 1, 128>}, {pipeline_mode = #tpu.pipeline_mode<synchronous>, transform_indices = @transform_3, window_bounds = array<i64: 1, 128>}, {pipeline_mode = #tpu.pipeline_mode<synchronous>, transform_indices = @transform_4, window_bounds = array<i64: 16, 128>}, {pipeline_mode = #tpu.pipeline_mode<synchronous>, transform_indices = @transform_5, window_bounds = array<i64: 128, 128>}, {transform_indices = @transform_6, window_bounds = array<i64: 8, 128>}]} {
    %c0_i32 = arith.constant 0 : i32
    %0 = arith.cmpi eq, %arg1, %c0_i32 : i32
    %1 = arith.extui %0 : i1 to i32
    %c0_i32_0 = arith.constant 0 : i32
    %2 = arith.cmpi ne, %1, %c0_i32_0 : i32
    scf.if %2 {
      %cst_37 = arith.constant -1.000000e+30 : f32
      %61 = vector.broadcast %cst_37 : f32 to vector<16x1xf32>
      %c0_38 = arith.constant 0 : index
      %c0_39 = arith.constant 0 : index
      %62 = vector.load %arg9[%c0_38, %c0_39] : memref<16x1xf32, #tpu.memory_space<vmem>>, vector<16x1xf32>
      tpu.vector_store %arg9[%c0_38, %c0_39], %61 {strides = array<i32>} : memref<16x1xf32, #tpu.memory_space<vmem>>, vector<16x1xf32>,
      %cst_40 = arith.constant 0.000000e+00 : f32
      %63 = vector.broadcast %cst_40 : f32 to vector<16x1xf32>
      %c0_41 = arith.constant 0 : index
      %c0_42 = arith.constant 0 : index
      %64 = vector.load %arg10[%c0_41, %c0_42] : memref<16x1xf32, #tpu.memory_space<vmem>>, vector<16x1xf32>
      tpu.vector_store %arg10[%c0_41, %c0_42], %63 {strides = array<i32>} : memref<16x1xf32, #tpu.memory_space<vmem>>, vector<16x1xf32>,
      %cst_43 = arith.constant 0.000000e+00 : f32
      %65 = vector.broadcast %cst_43 : f32 to vector<16x1xf32>
      %c0_44 = arith.constant 0 : index
      %c0_45 = arith.constant 0 : index
      %66 = vector.load %arg11[%c0_44, %c0_45] : memref<16x1xf32, #tpu.memory_space<vmem>>, vector<16x1xf32>
      tpu.vector_store %arg11[%c0_44, %c0_45], %65 {strides = array<i32>} : memref<16x1xf32, #tpu.memory_space<vmem>>, vector<16x1xf32>,
      %cst_46 = arith.constant 0.000000e+00 : f32
      %67 = vector.broadcast %cst_46 : f32 to vector<16x1xf32>
      %c0_47 = arith.constant 0 : index
      %c0_48 = arith.constant 0 : index
      %68 = vector.load %arg12[%c0_47, %c0_48] : memref<16x1xf32, #tpu.memory_space<vmem>>, vector<16x1xf32>
      tpu.vector_store %arg12[%c0_47, %c0_48], %67 {strides = array<i32>} : memref<16x1xf32, #tpu.memory_space<vmem>>, vector<16x1xf32>,
    } else {
    }
    %c0 = arith.constant 0 : index
    %c0_1 = arith.constant 0 : index
    %3 = vector.load %arg6[%c0, %c0_1] : memref<16x128xf32, #tpu.memory_space<vmem>>, vector<16x128xf32>
    %c0_2 = arith.constant 0 : index
    %c0_3 = arith.constant 0 : index
    %4 = vector.load %arg7[%c0_2, %c0_3] : memref<128x128xf32, #tpu.memory_space<vmem>>, vector<128x128xf32>
    %cst = arith.constant dense<0.000000e+00> : vector<16x128xf32>
    %5 = tpu.matmul %3, %4, %cst {dimension_numbers = #tpu.dot_dimension_numbers<[1], [0], [0], [1], [0, 0, 1, 1], [], []>} : vector<16x128xf32>, vector<128x128xf32>, vector<16x128xf32> -> vector<16x128xf32>
    %c0_4 = arith.constant 0 : index
    %c0_5 = arith.constant 0 : index
    %6 = vector.load %arg4[%c0_4, %c0_5] : memref<1x128xf32, #tpu.memory_space<vmem>>, vector<1x128xf32>
    %7 = vector.broadcast %6 : vector<1x128xf32> to vector<16x128xf32>
    %8 = arith.addf %5, %7 : vector<16x128xf32>
    %c16_i32 = arith.constant 16 : i32
    %9 = arith.muli %arg0, %c16_i32 : i32
    %10 = tpu.iota {dimensions = array<i32: 0>} : vector<16x1xi32>
    %11 = vector.broadcast %9 : i32 to vector<16x1xi32>
    %12 = arith.addi %11, %10 : vector<16x1xi32>
    %c0_6 = arith.constant 0 : index
    %c0_7 = arith.constant 0 : index
    %13 = vector.load %arg5[%c0_6, %c0_7] : memref<1x128xi32, #tpu.memory_space<vmem>>, vector<1x128xi32>
    %14 = vector.broadcast %13 : vector<1x128xi32> to vector<16x128xi32>
    %15 = vector.broadcast %12 : vector<16x1xi32> to vector<16x128xi32>
    %16 = arith.cmpi ne, %14, %15 : vector<16x128xi32>
    %c0_8 = arith.constant 0 : index
    %c0_9 = arith.constant 0 : index
    %17 = vector.load %arg2[%c0_8, %c0_9] : memref<16x1xi32, #tpu.memory_space<vmem>>, vector<16x1xi32>
    %c0_10 = arith.constant 0 : index
    %c0_11 = arith.constant 0 : index
    %18 = vector.load %arg3[%c0_10, %c0_11] : memref<1x128xi32, #tpu.memory_space<vmem>>, vector<1x128xi32>
    %19 = vector.broadcast %17 : vector<16x1xi32> to vector<16x128xi32>
    %20 = vector.broadcast %18 : vector<1x128xi32> to vector<16x128xi32>
    %21 = arith.cmpi eq, %19, %20 : vector<16x128xi32>
    %22 = arith.andi %16, %21 : vector<16x128xi1>
    %23 = arith.extui %22 : vector<16x128xi1> to vector<16x128xi32>
    %24 = arith.sitofp %23 : vector<16x128xi32> to vector<16x128xf32>
    %c0_12 = arith.constant 0 : index
    %c0_13 = arith.constant 0 : index
    %25 = vector.load %arg9[%c0_12, %c0_13] : memref<16x1xf32, #tpu.memory_space<vmem>>, vector<16x1xf32>
    %cst_14 = arith.constant dense<0xFF800000> : vector<16xf32>
    %26 = vector.multi_reduction <maximumf>, %8, %cst_14 [1] : vector<16x128xf32> to vector<16xf32>
    %27 = vector.shape_cast %26 : vector<16xf32> to vector<16x1xf32>
    %28 = arith.maximumf %25, %27 : vector<16x1xf32>
    %29 = vector.broadcast %28 : vector<16x1xf32> to vector<16x128xf32>
    %30 = arith.subf %8, %29 : vector<16x128xf32>
    %31 = math.exp %30 : vector<16x128xf32>
    %cst_15 = arith.constant 0.000000e+00 : f32
    %32 = vector.broadcast %cst_15 : f32 to vector<16x128xf32>
    %33 = arith.select %16, %31, %32 : vector<16x128xi1>, vector<16x128xf32>
    %34 = arith.subf %25, %28 : vector<16x1xf32>
    %35 = math.exp %34 : vector<16x1xf32>
    %c0_16 = arith.constant 0 : index
    %c0_17 = arith.constant 0 : index
    %36 = vector.load %arg10[%c0_16, %c0_17] : memref<16x1xf32, #tpu.memory_space<vmem>>, vector<16x1xf32>
    %37 = arith.mulf %36, %35 : vector<16x1xf32>
    %cst_18 = arith.constant dense<0.000000e+00> : vector<16xf32>
    %38 = vector.multi_reduction <add>, %33, %cst_18 [1] : vector<16x128xf32> to vector<16xf32>
    %39 = vector.shape_cast %38 : vector<16xf32> to vector<16x1xf32>
    %40 = arith.addf %37, %39 : vector<16x1xf32>
    %c0_19 = arith.constant 0 : index
    %c0_20 = arith.constant 0 : index
    %41 = vector.load %arg10[%c0_19, %c0_20] : memref<16x1xf32, #tpu.memory_space<vmem>>, vector<16x1xf32>
    tpu.vector_store %arg10[%c0_19, %c0_20], %40 {strides = array<i32>} : memref<16x1xf32, #tpu.memory_space<vmem>>, vector<16x1xf32>,
    %c0_21 = arith.constant 0 : index
    %c0_22 = arith.constant 0 : index
    %42 = vector.load %arg12[%c0_21, %c0_22] : memref<16x1xf32, #tpu.memory_space<vmem>>, vector<16x1xf32>
    %c0_23 = arith.constant 0 : index
    %c0_24 = arith.constant 0 : index
    %43 = vector.load %arg11[%c0_23, %c0_24] : memref<16x1xf32, #tpu.memory_space<vmem>>, vector<16x1xf32>
    %44 = arith.subf %25, %28 : vector<16x1xf32>
    %45 = arith.mulf %43, %44 : vector<16x1xf32>
    %46 = arith.addf %42, %45 : vector<16x1xf32>
    %47 = arith.mulf %24, %30 : vector<16x128xf32>
    %cst_25 = arith.constant dense<0.000000e+00> : vector<16xf32>
    %48 = vector.multi_reduction <add>, %47, %cst_25 [1] : vector<16x128xf32> to vector<16xf32>
    %49 = vector.shape_cast %48 : vector<16xf32> to vector<16x1xf32>
    %50 = arith.addf %46, %49 : vector<16x1xf32>
    %c0_26 = arith.constant 0 : index
    %c0_27 = arith.constant 0 : index
    %51 = vector.load %arg12[%c0_26, %c0_27] : memref<16x1xf32, #tpu.memory_space<vmem>>, vector<16x1xf32>
    tpu.vector_store %arg12[%c0_26, %c0_27], %50 {strides = array<i32>} : memref<16x1xf32, #tpu.memory_space<vmem>>, vector<16x1xf32>,
    %c0_28 = arith.constant 0 : index
    %c0_29 = arith.constant 0 : index
    %52 = vector.load %arg11[%c0_28, %c0_29] : memref<16x1xf32, #tpu.memory_space<vmem>>, vector<16x1xf32>
    %cst_30 = arith.constant dense<0.000000e+00> : vector<16xf32>
    %53 = vector.multi_reduction <add>, %24, %cst_30 [1] : vector<16x128xf32> to vector<16xf32>
    %54 = vector.shape_cast %53 : vector<16xf32> to vector<16x1xf32>
    %55 = arith.addf %52, %54 : vector<16x1xf32>
    %c0_31 = arith.constant 0 : index
    %c0_32 = arith.constant 0 : index
    %56 = vector.load %arg11[%c0_31, %c0_32] : memref<16x1xf32, #tpu.memory_space<vmem>>, vector<16x1xf32>
    tpu.vector_store %arg11[%c0_31, %c0_32], %55 {strides = array<i32>} : memref<16x1xf32, #tpu.memory_space<vmem>>, vector<16x1xf32>,
    %c0_33 = arith.constant 0 : index
    %c0_34 = arith.constant 0 : index
    %57 = vector.load %arg9[%c0_33, %c0_34] : memref<16x1xf32, #tpu.memory_space<vmem>>, vector<16x1xf32>
    tpu.vector_store %arg9[%c0_33, %c0_34], %28 {strides = array<i32>} : memref<16x1xf32, #tpu.memory_space<vmem>>, vector<16x1xf32>,
    %c0_i32_35 = arith.constant 0 : i32
    %58 = arith.cmpi eq, %arg1, %c0_i32_35 : i32
    %59 = arith.extui %58 : i1 to i32
    %c0_i32_36 = arith.constant 0 : i32
    %60 = arith.cmpi ne, %59, %c0_i32_36 : i32
    scf.if %60 {
      %c0_37 = arith.constant 0 : index
      %c0_38 = arith.constant 0 : index
      %61 = vector.load %arg11[%c0_37, %c0_38] : memref<16x1xf32, #tpu.memory_space<vmem>>, vector<16x1xf32>
      %c0_39 = arith.constant 0 : index
      %c0_40 = arith.constant 0 : index
      %62 = vector.load %arg12[%c0_39, %c0_40] : memref<16x1xf32, #tpu.memory_space<vmem>>, vector<16x1xf32>
      %c0_41 = arith.constant 0 : index
      %c0_42 = arith.constant 0 : index
      %63 = vector.load %arg10[%c0_41, %c0_42] : memref<16x1xf32, #tpu.memory_space<vmem>>, vector<16x1xf32>
      %64 = math.log %63 : vector<16x1xf32>
      %65 = arith.mulf %64, %61 : vector<16x1xf32>
      %66 = arith.subf %62, %65 : vector<16x1xf32>
      %cst_43 = arith.constant 0.000000e+00 : f32
      %67 = vector.broadcast %cst_43 : f32 to vector<16x1xf32>
      %68 = arith.subf %67, %66 : vector<16x1xf32>
      %69 = tpu.reciprocal %61 {approx = true} : vector<16x1xf32> -> vector<16x1xf32>
      %70 = arith.mulf %68, %69 : vector<16x1xf32>
      %c8_i32 = arith.constant 8 : i32
      %71 = vector.broadcast %c8_i32 : i32 to vector<16x1xi32>
      %72 = arith.cmpi slt, %12, %71 : vector<16x1xi32>
      %cst_44 = arith.constant 0.000000e+00 : f32
      %73 = vector.broadcast %cst_44 : f32 to vector<16x1xf32>
      %74 = arith.select %72, %70, %73 : vector<16x1xi1>, vector<16x1xf32>
      %75 = vector.shape_cast %74 : vector<16x1xf32> to vector<1x16x1xf32>
      %cst_45 = arith.constant dense<0.000000e+00> : vector<1xf32>
      %76 = vector.multi_reduction <add>, %75, %cst_45 [1, 2] : vector<1x16x1xf32> to vector<1xf32>
      %77 = vector.shape_cast %76 : vector<1xf32> to vector<1x1x1xf32>
      %78 = vector.extract %77[0, 0, 0] : f32 from vector<1x1x1xf32>
      %79 = vector.broadcast %78 : f32 to vector<1x1xf32>
      %80 = vector.shape_cast %79 : vector<1x1xf32> to vector<1x1xf32>
      %81 = vector.broadcast %80 : vector<1x1xf32> to vector<8x128xf32>
      %c0_46 = arith.constant 0 : index
      %c0_47 = arith.constant 0 : index
      %82 = vector.load %arg8[%c0_46, %c0_47] : memref<8x128xf32, #tpu.memory_space<vmem>>, vector<8x128xf32>
      tpu.vector_store %arg8[%c0_46, %c0_47], %81 {strides = array<i32>} : memref<8x128xf32, #tpu.memory_space<vmem>>, vector<8x128xf32>,
    } else {
    }
    return
  }
  func.func @transform_0(%arg0: i32, %arg1: i32) -> (i32, i32) {
    %c0_i32 = arith.constant 0 : i32
    %c0_i32_0 = arith.constant 0 : i32
    return %arg0, %c0_i32 : i32, i32
  }
  func.func @transform_1(%arg0: i32, %arg1: i32) -> (i32, i32) {
    %c0_i32 = arith.constant 0 : i32
    %c0_i32_0 = arith.constant 0 : i32
    return %c0_i32, %arg1 : i32, i32
  }
  func.func @transform_2(%arg0: i32, %arg1: i32) -> (i32, i32) {
    %c0_i32 = arith.constant 0 : i32
    %c0_i32_0 = arith.constant 0 : i32
    return %c0_i32, %arg1 : i32, i32
  }
  func.func @transform_3(%arg0: i32, %arg1: i32) -> (i32, i32) {
    %c0_i32 = arith.constant 0 : i32
    %c0_i32_0 = arith.constant 0 : i32
    return %c0_i32, %arg1 : i32, i32
  }
  func.func @transform_4(%arg0: i32, %arg1: i32) -> (i32, i32) {
    %c0_i32 = arith.constant 0 : i32
    %c0_i32_0 = arith.constant 0 : i32
    return %arg0, %c0_i32 : i32, i32
  }
  func.func @transform_5(%arg0: i32, %arg1: i32) -> (i32, i32) {
    %c0_i32 = arith.constant 0 : i32
    %c0_i32_0 = arith.constant 0 : i32
    return %c0_i32, %arg1 : i32, i32
  }
  func.func @transform_6(%arg0: i32, %arg1: i32) -> (i32, i32) {
    %c0_i32 = arith.constant 0 : i32
    %c0_i32_0 = arith.constant 0 : i32
    return %arg0, %c0_i32 : i32, i32
  }
}

</mosaic_0001>

<bundles_post_ra>
// kernel: tpu_custom_call.1
= control target key start
LH: loop header
LB: loop body
LE: loop exit
PB: predicated region body
PF: predicated region fallthrough
CT: control target
= control target key end

     0   :  { %11 = vsyncpa [#allocation7], 0  ;;  %s552_s0 = inlined_call_operand.vmem [shape: s32[16,1], index: 0, kind: input, shape index: {}]   ;;  %s553_s1 = inlined_call_operand.vmem [shape: s32[1,128], index: 1, kind: input, shape index: {}]   ;;  %s554_s2 = inlined_call_operand.vmem [shape: f32[1,128], index: 2, kind: input, shape index: {}]   ;;  %s555_s3 = inlined_call_operand.vmem [shape: s32[1,128], index: 3, kind: input, shape index: {}]   ;;  %s556_s4 = inlined_call_operand.vmem [shape: f32[16,128], index: 4, kind: input, shape index: {}]   ;;  %s557_s5 = inlined_call_operand.hbm [shape: f32[128,128], index: 5, kind: input, shape index: {}]   ;;  %s558_s6 = inlined_call_operand.hbm [shape: f32[8,128], index: 6, kind: output, shape index: {}]  }
   0x1   :  { %12 = vsyncpa [#allocation8], 0  ;;  %s442_s21 = smov [#allocation6]  }
   0x2   :  { %s28_s22 = sshll.u32 %s442_s21, 4  ;;  %s29_s22 = int_to_ptr.vmem [resolvable:$true] %s28_s22 }
   0x3   :  { %s406_s23 = scalar_lea.vmem %s29_s22, 2048  ;;  %p411_p1 = scmp.lt.s32.totalorder %s29_s22, %s29_s22 }
   0x4   :  { %p407_p0 = scmp.ne.s32.totalorder %s29_s22, %s406_s23  ;;  %p412_p2 = scmp.lt.s32.totalorder %s406_s23, %s406_s23 }
   0x6   :  { %p413_p3 = por %p412_p2, %p411_p1 }
   0x8   :  { %p414_p4 = pnand %p413_p3, %p407_p0 }
   0xa   :  { %417 = shalt.err (!%p414_p4)
}
   0xb   :  { %s443_s24 = smov 128   ;;  %s444_s25 = smov 8  }
   0xc   :  { %34 = dma.hbm_to_vmem [thread:$0]  %s557_s5, 2048, %s29_s22, [#allocation7], %s443_s24, %s443_s24, %s444_s25  }
   0xd   :  { %438 = dma.done.wait [#allocation7], 2048  }
   0xe   :  { %439 = vsyncadd [#allocation7], 4294965248  ;;  %v68_v0 = vld [vmem:[#allocation6 + $0x78] sm:$0xff]  ;;  %v67_v1 = vld [vmem:[#allocation6 + $0x70] sm:$0xff]  ;;  %vm42_vm0 = vcmask 7168   ;;  %v446_v24 = vmov 0.0   ;;  %v152_v31 = vlaneseq }
   0xf   :  { %340 = vmatprep.subr.mxu0 %v68_v0  ;;  %v66_v2 = vld [vmem:[#allocation6 + $0x68] sm:$0xff]  ;;  %v65_v3 = vld [vmem:[#allocation6 + $0x60] sm:$0xff]  ;;  %v51_v4 = vld [vmem:[%s556_s4] sm:$0xff]  ;;  %v445_v18 = vmov -1e+30   ;;  %47 = vst.msk [vmem:[#allocation4] sm:$0xff] %vm42_vm0, %v446_v24 }
  0x10   :  { %341 = vmatpush3.msra.mxu0 %v68_v0  ;;  %v64_v5 = vld [vmem:[#allocation6 + $0x58] sm:$0xff]  ;;  %372 = vmatprep.mubr.f32.mxu0 %v51_v4  ;;  %v63_v6 = vld [vmem:[#allocation6 + $0x50] sm:$0xff]  ;;  %v62_v7 = vld [vmem:[#allocation6 + $0x48] sm:$0xff]  ;;  %43 = vst.msk [vmem:[#allocation2] sm:$0xff] %vm42_vm0, %v445_v18  ;;  %v447_v25 = vmov 0   ;;  %v153_v32 = vshrl.u32 %v152_v31, 7 }
  0x11   :  { %342 = vmatprep.subr.mxu0 %v67_v1  ;;  %v61_v8 = vld [vmem:[#allocation6 + $0x40] sm:$0xff]  ;;  %v60_v9 = vld [vmem:[#allocation6 + $0x38] sm:$0xff]  ;;  %v59_v10 = vld [vmem:[#allocation6 + $0x30] sm:$0xff]  ;;  %44 = vst.msk [vmem:[#allocation2 + $0x8] sm:$0xff] %vm42_vm0, %v445_v18  ;;  %385 = vset.pattern.permute.xlu1 %v447_v25 }
  0x12   :  { %343 = vmatpush3.msra.mxu0 %v67_v1  ;;  %v58_v11 = vld [vmem:[#allocation6 + $0x28] sm:$0xff]  ;;  %v57_v12 = vld [vmem:[#allocation6 + $0x20] sm:$0xff]  ;;  %v56_v13 = vld [vmem:[#allocation6 + $0x18] sm:$0xff]  ;;  %48 = vst.msk [vmem:[#allocation4 + $0x8] sm:$0xff] %vm42_vm0, %v446_v24  ;;  %384 = vset.pattern.permute.xlu0 %v447_v25 }
  0x13   :  { %344 = vmatprep.subr.mxu0 %v66_v2  ;;  %v55_v14 = vld [vmem:[#allocation6 + $0x10] sm:$0xff]  ;;  %v54_v15 = vld [vmem:[#allocation6 + $0x8] sm:$0xff]  ;;  %v53_v16 = vld [vmem:[#allocation6] sm:$0xff]  ;;  %45 = vst.msk [vmem:[#allocation3] sm:$0xff] %vm42_vm0, %v446_v24 }
  0x14   :  { %345 = vmatpush3.msra.mxu0 %v66_v2  ;;  %v52_v17 = vld [vmem:[%s556_s4 + $0x8] sm:$0xff]  ;;  %v317_v19 = vld [vmem:[%s554_s2] ss:$0 sm:$0xff]  ;;  %46 = vst.msk [vmem:[#allocation3 + $0x8] sm:$0xff] %vm42_vm0, %v446_v24  ;;  %49 = vst.msk [vmem:[#allocation5] sm:$0xff] %vm42_vm0, %v446_v24 }
  0x15   :  { %346 = vmatprep.subr.mxu0 %v65_v3  ;;  %50 = vst.msk [vmem:[#allocation5 + $0x8] sm:$0xff] %vm42_vm0, %v446_v24  ;;  %v165_v26 = vld [vmem:[%s552_s0] sm:$0xff]  ;;  %v166_v62 = vld [vmem:[%s552_s0 + $0x8] sm:$0xff]  ;;  %s448_s0 = smov [#allocation9]  }
  0x16   :  { %347 = vmatpush3.msra.mxu0 %v65_v3  ;;  %169 = vperm.xlu1 %385, %v165_v26   ;;  %v519_v33 = vld [vmem:[%s553_s1] ss:$0 sm:$0xff]  ;;  %v233_v43 = vld [vmem:[#allocation4] sm:$0xff]  ;;  %s308_s13 = sshll.u32 %s448_s0, 4  ;;  %s309_s13 = int_to_ptr.vmem [resolvable:$true] %s308_s13 }
  0x17   :  { %348 = vmatprep.subr.mxu0 %v64_v5  ;;  %v186_v27 = vld [vmem:[#allocation2] sm:$0xff]  ;;  %v524_v35 = vld [vmem:[%s555_s3] ss:$0 sm:$0xff]  ;;  %s418_s15 = scalar_lea.vmem %s309_s13, 128  ;;  %p423_p6 = scmp.lt.s32.totalorder %s309_s13, %s309_s13 }
  0x18   :  { %349 = vmatpush3.msra.mxu0 %v64_v5  ;;  %vm163_vm1 = vcmp.ne.s32.totalorder %v524_v35, %v153_v32  ;;  %v187_v57 = vld [vmem:[#allocation2 + $0x8] sm:$0xff]  ;;  %p419_p5 = scmp.ne.s32.totalorder %s309_s13, %s418_s15  ;;  %p424_p7 = scmp.lt.s32.totalorder %s418_s15, %s418_s15 }
  0x19   :  { %350 = vmatprep.subr.mxu0 %v63_v6 }
  0x1a   :  { %351 = vmatpush3.msra.mxu0 %v63_v6  ;;  %v218_v51 = vld [vmem:[#allocation3] sm:$0xff]  ;;  %p425_p8 = por %p424_p7, %p423_p6 }
  0x1b   :  { %352 = vmatprep.subr.mxu0 %v62_v7  ;;  %v231_v46 = vld [vmem:[#allocation5] sm:$0xff] }
  0x1c   :  { %353 = vmatpush3.msra.mxu0 %v62_v7  ;;  %p426_p9 = pnand %p425_p8, %p419_p5 }
  0x1d   :  { %354 = vmatprep.subr.mxu0 %v61_v8 }
  0x1e   :  { %355 = vmatpush3.msra.mxu0 %v61_v8 }
  0x1f   :  { %356 = vmatprep.subr.mxu0 %v60_v9 }
  0x20   :  { %357 = vmatpush3.msra.mxu0 %v60_v9 }
  0x21   :  { %358 = vmatprep.subr.mxu0 %v59_v10 }
  0x22   :  { %359 = vmatpush3.msra.mxu0 %v59_v10 }
  0x23   :  { %360 = vmatprep.subr.mxu0 %v58_v11 }
  0x24   :  { %361 = vmatpush3.msra.mxu0 %v58_v11 }
  0x25   :  { %362 = vmatprep.subr.mxu0 %v57_v12 }
  0x26   :  { %363 = vmatpush3.msra.mxu0 %v57_v12  ;;  %v154_v12 = vadd.s32 8, %v153_v32 }
  0x27   :  { %364 = vmatprep.subr.mxu0 %v56_v13 }
  0x28   :  { %365 = vmatpush3.msra.mxu0 %v56_v13  ;;  %vm164_vm4 = vcmp.ne.s32.totalorder %v524_v35, %v154_v12 }
  0x29   :  { %366 = vmatprep.subr.mxu0 %v55_v14 }
  0x2a   :  { %367 = vmatpush3.msra.mxu0 %v55_v14 }
  0x2b   :  { %368 = vmatprep.subr.mxu0 %v54_v15 }
  0x2c   :  { %369 = vmatpush3.msra.mxu0 %v54_v15 }
  0x2d   :  { %370 = vmatprep.subr.mxu0 %v53_v16 }
  0x2e   :  { %371 = vmatpush3.msra.mxu0 %v53_v16 }
  0x2f   :  { %373 = vmatmul.mubr.f32.vlgmr.msra.gmra.mxu0 %v52_v17 }
  0x91   :  { %v170_v34 = vpop.permute.xlu1 %169 }
  0x92   :  { %vm178_vm2 = vcmp.eq.s32.totalorder %v170_v34, %v519_v33 }
  0x93   :  { %vm180_vm3 = vmand %vm163_vm1, %vm178_vm2 }
  0x94   :  { %v320_v37 = vsel %vm180_vm3, 1.0, %v446_v24 }
  0xef   :  { %v374_v20 = vpop.f32.mrf.mxu0 }
  0xf0   :  { %v498_v21 = vadd.f32 %v374_v20, %v317_v19 }
  0xf1   :  { %v142_v22 = vpop.f32.mrf.mxu0 }
  0xf2   :  { %v143_v23 = vadd.f32 %v317_v19, %v142_v22 }
  0xf4   :  { %188 = vmax.xlane.f32.xlu0 %v143_v23 }
 0x17d   :  { %v189_v28 = vpop.xlane.xlu0 %188 }
 0x17e   :  { %v192_v29 = vmax.f32 %v186_v27, %v189_v28 }
 0x180   :  { %v212_v30 = vsub.f32 %v186_v27, %v192_v29  ;;  %259 = vst.msk [vmem:[#allocation2] sm:$0xff] %vm42_vm0, %v192_v29  ;;  %196 = vperm.xlu0 %384, %v192_v29  }
 0x182   :  { %v214_v44 = vmul.f32 1.442695, %v212_v30  ;;  %v235_v45 = vmul.f32 %v233_v43, %v212_v30 }
 0x184   :  { %v237_v47 = vadd.f32 %v235_v45, %v231_v46 }
 0x1fb   :  { %v197_v36 = vpop.permute.xlu0 %196 }
 0x1fc   :  { %v204_v38 = vsub.f32 %v143_v23, %v197_v36 }
 0x1fe   :  { %v206_v39 = vmul.f32 1.442695, %v204_v38  ;;  %v239_v40 = vmul.f32 %v320_v37, %v204_v38 }
 0x200   :  { %386 = vpow2.f32 %v206_v39  ;;  %241 = vadd.xlane.f32.xlu0 %v239_v40 }
 0x201   :  { %388 = vpow2.f32 %v214_v44 }
 0x20d   :  { %v387_v41 = vpop.eup %386 }
 0x20e   :  { %v210_v42 = vsel %vm163_vm1, %v387_v41, 0.0  ;;  %v389_v50 = vpop.eup %388 }
 0x20f   :  { %222 = vadd.xlane.f32.xlu1 %v210_v42  ;;  %v220_v52 = vmul.f32 %v389_v50, %v218_v51 }
 0x213   :  { %251 = vadd.xlane.f32.xlu1 %v320_v37 }
 0x217   :  { %190 = vmax.xlane.f32.xlu1 %v498_v21 }
 0x289   :  { %v242_v48 = vpop.xlane.xlu0 %241 }
 0x28a   :  { %v245_v49 = vadd.f32 %v242_v48, %v237_v47 }
 0x28c   :  { %247 = vst.msk [vmem:[#allocation5] sm:$0xff] %vm42_vm0, %v245_v49 }
 0x293   :  { %v266_v3 = vld [vmem:[#allocation5] sm:$0xff] }
 0x298   :  { %v223_v53 = vpop.xlane.xlu1 %222 }
 0x299   :  { %v226_v54 = vadd.f32 %v223_v53, %v220_v52 }
 0x29b   :  { %229 = vst.msk [vmem:[#allocation3] sm:$0xff] %vm42_vm0, %v226_v54 }
 0x29c   :  { %v252_v55 = vpop.xlane.xlu1 %251 }
 0x29d   :  { %v255_v56 = vadd.f32 %v252_v55, %v233_v43 }
 0x29f   :  { %257 = vst.msk [vmem:[#allocation4] sm:$0xff] %vm42_vm0, %v255_v56 }
 0x2a0   :  { %v191_v58 = vpop.xlane.xlu1 %190 }
 0x2a1   :  { %v193_v59 = vmax.f32 %v187_v57, %v191_v58 }
 0x2a2   :  { %v268_v61 = vld [vmem:[#allocation3] sm:$0xff] }
 0x2a3   :  { %v533_v60 = vsub.f32 %v187_v57, %v193_v59  ;;  %260 = vst.msk [vmem:[#allocation2 + $0x8] sm:$0xff] %vm42_vm0, %v193_v59  ;;  %201 = vperm.xlu1 %385, %v193_v59   ;;  %390 = vlog2.f32 %v268_v61 }
 0x2a6   :  { %v264_v0 = vld [vmem:[#allocation4] sm:$0xff] }
 0x2a7   :  { %172 = vperm.xlu1 %385, %v166_v62   ;;  %392 = vrcp.f32 %v264_v0 }
 0x2b0   :  { %v391_v63 = vpop.eup %390 }
 0x2b1   :  { %v271_v1 = vmul.f32 0.6931472, %v391_v63 }
 0x2b3   :  { %v274_v2 = vmul.f32 %v271_v1, %v264_v0 }
 0x2b4   :  { %v393_v6 = vpop.eup %392 }
 0x2b5   :  { %v276_v4 = vsub.f32 %v266_v3, %v274_v2 }
 0x2b7   :  { %v278_v5 = vsub.f32 0.0, %v276_v4 }
 0x2b9   :  { %v282_v7 = vmul.f32 %v393_v6, %v278_v5 }
 0x2bb   :  { %v288_v8 = vsel %vm42_vm0, %v282_v7, 0.0 }
 0x2cb   :  { %291 = vadd.xlane.f32.xlu1 %v288_v8 }
 0x31e   :  { %v202_v9 = vpop.permute.xlu1 %201 }
 0x31f   :  { %v205_v10 = vsub.f32 %v498_v21, %v202_v9 }
 0x321   :  { %v208_v11 = vmul.f32 1.442695, %v205_v10 }
 0x322   :  { %v173_v13 = vpop.permute.xlu1 %172 }
 0x323   :  { %394 = vpow2.f32 %v208_v11  ;;  %vm179_vm5 = vcmp.eq.s32.totalorder %v173_v13, %v519_v33 }
 0x324   :  { %vm181_vm6 = vmand %vm164_vm4, %vm179_vm5 }
 0x325   :  { %v321_v16 = vsel %vm181_vm6, 1.0, %v446_v24 }
 0x326   :  { %v240_v17 = vmul.f32 %v321_v16, %v205_v10 }
 0x330   :  { %v395_v14 = vpop.eup %394 }
 0x331   :  { %v211_v15 = vsel %vm164_vm4, %v395_v14, 0.0 }
 0x332   :  { %224 = vadd.xlane.f32.xlu0 %v211_v15 }
 0x336   :  { %243 = vadd.xlane.f32.xlu0 %v240_v17 }
 0x33a   :  { %253 = vadd.xlane.f32.xlu0 %v321_v16 }
 0x354   :  { %v292_v18 = vpop.xlane.xlu1 %291 }
 0x355   :  { %v293_v19 = vrot.slane %v292_v18, 4 }
 0x357   :  { %v294_v20 = vadd.f32 %v293_v19, %v292_v18 }
 0x359   :  { %v295_v21 = vrot.slane %v294_v20, 2 }
 0x35b   :  { %v296_v22 = vadd.f32 %v295_v21, %v294_v20 }
 0x35d   :  { %v297_v23 = vrot.slane %v296_v22, 1 }
 0x35f   :  { %v298_v25 = vadd.f32 %v297_v23, %v296_v22 }
 0x361   :  { %375 = vpush %v298_v25 }
 0x392   :  { %s376_s14 = spop %375 }
 0x393   :  { %v300_v26 = vstv %s376_s14 }
 0x394   :  { %301 = vst [vmem:[#allocation9] sm:$0xff] %v300_v26 }
 0x395   :  { %429 = shalt.err (!%p426_p9)
}
 0x396   :  { %311 = dma.vmem_to_hbm [thread:$0]  %s309_s13, 128, %s558_s6, [#allocation8]   ;;  %v216_v24 = vmul.f32 1.442695, %v533_v60  ;;  %v219_v28 = vld [vmem:[#allocation3 + $0x8] sm:$0xff]  ;;  %v234_v29 = vld [vmem:[#allocation4 + $0x8] sm:$0xff] }
 0x397   :  { %v236_v31 = vmul.f32 %v234_v29, %v533_v60  ;;  %v232_v33 = vld [vmem:[#allocation5 + $0x8] sm:$0xff] }
 0x398   :  { %396 = vpow2.f32 %v216_v24 }
 0x399   :  { %v238_v35 = vadd.f32 %v236_v31, %v232_v33 }
 0x3a5   :  { %v397_v27 = vpop.eup %396 }
 0x3a6   :  { %v221_v30 = vmul.f32 %v397_v27, %v219_v28 }
 0x3bb   :  { %v225_v32 = vpop.xlane.xlu0 %224 }
 0x3bc   :  { %v227_v34 = vadd.f32 %v225_v32, %v221_v30 }
 0x3be   :  { %230 = vst.msk [vmem:[#allocation3 + $0x8] sm:$0xff] %vm42_vm0, %v227_v34 }
 0x3bf   :  { %v244_v36 = vpop.xlane.xlu0 %243 }
 0x3c0   :  { %v246_v37 = vadd.f32 %v244_v36, %v238_v35 }
 0x3c2   :  { %248 = vst.msk [vmem:[#allocation5 + $0x8] sm:$0xff] %vm42_vm0, %v246_v37 }
 0x3c3   :  { %v254_v38 = vpop.xlane.xlu0 %253 }
 0x3c4   :  { %v256_v39 = vadd.f32 %v254_v38, %v234_v29 }
 0x3c6   :  { %258 = vst.msk [vmem:[#allocation4 + $0x8] sm:$0xff] %vm42_vm0, %v256_v39 }
 0x3c7   :  { %440 = dma.done.wait [#allocation8], 128  }
 0x3c8   :  { %441 = vsyncadd [#allocation8], 4294967168 }
 0x3c9   :  { %315 = vsyncpa [#allocation7], 1 }
 0x3ca   :  { %316 = vsyncpa [#allocation8], 1 }

</bundles_post_ra>
